<compile_context>
chip_gen: v5e
topology: v5e:2x2
jax: 0.10.0
libtpu: 0.0.40
codegen_flags: <defaults>
</compile_context>

<pallas_src>
import numpy as np
import jax
import jax.numpy as jnp
from jax import lax
from jax.experimental import pallas as pl
from jax.experimental.pallas import tpu as pltpu

JOINTS_MAPPING = [5, 6, 7, 9, 10, 11, 17, 18, 19, 13, 14, 15, 1, 2, 3]


def _round_up(x, m):
    return ((x + m - 1) // m) * m


def _up_axis_base():
    # [0,1,0] for the 12 non-thumb joints, [1,1,1] for the 3 thumb joints.
    up = np.vstack((
        np.array([[0.0, 1.0, 0.0]]).repeat(12, axis=0),
        np.array([[1.0, 1.0, 1.0]]).repeat(3, axis=0),
    )).astype(np.float32)  # (15, 3)
    return jnp.asarray(up)


def _axis_kernel(in_ref, out_ref):
    # in_ref  : (12, 15, TB)  rows 0-2: d components; rows 3-11: R[i,j] at 3+i*3+j
    # out_ref : (9, 15, TB)   rows 0-2: back, 3-5: up, 6-8: left (normalized)
    dx = in_ref[0]            # (15, TB) full-lane plane reads
    dy = in_ref[1]
    dz = in_ref[2]

    # b = R^T @ d   =>   b_j = sum_i R[i, j] * d_i
    bx = in_ref[3] * dx + in_ref[6] * dy + in_ref[9] * dz
    by = in_ref[4] * dx + in_ref[7] * dy + in_ref[10] * dz
    bz = in_ref[5] * dx + in_ref[8] * dy + in_ref[11] * dz

    # up-axis baked in as constants: up = (t, 1, t) with t = 1 for the three
    # thumb joints (sublane index >= 12) and 0 otherwise.
    thumb = (lax.broadcasted_iota(jnp.int32, bx.shape, 0) >= 12).astype(bx.dtype)

    # l = b x up
    lx = by * thumb - bz
    ly = (bz - bx) * thumb
    lz = bx - by * thumb

    # u = l x b
    ux = ly * bz - lz * by
    uy = lz * bx - lx * bz
    uz = lx * by - ly * bx

    inv_bn = lax.rsqrt(bx * bx + by * by + bz * bz)
    inv_ln = lax.rsqrt(lx * lx + ly * ly + lz * lz)
    inv_un = inv_bn * inv_ln          # |u| = |l| * |b| since l is perp. to b

    out_ref[0] = bx * inv_bn
    out_ref[1] = by * inv_bn
    out_ref[2] = bz * inv_bn
    out_ref[3] = ux * inv_un
    out_ref[4] = uy * inv_un
    out_ref[5] = uz * inv_un
    out_ref[6] = lx * inv_ln
    out_ref[7] = ly * inv_ln
    out_ref[8] = lz * inv_ln


def axis_layer_pallas(hand_joints, transf, *, max_tb=8192, lane_dense_output=False):
    """hand_joints: [B, 21, 3] f32, transf: [B, 16, 4, 4] f32

    Returns (b_axis, u_axis, l_axis), each [B, 15, 3] f32.
    With lane_dense_output=True, returns the stacked (9, 15, B) slab instead
    (rows 0-2 back, 3-5 up, 6-8 left), skipping the output back-transpose for
    consumers that can accept the lane-dense layout.
    """
    hand_joints = hand_joints.astype(jnp.float32)
    transf = transf.astype(jnp.float32)
    B = hand_joints.shape[0]
    mapping = jnp.asarray(JOINTS_MAPPING, dtype=jnp.int32)

    # XLA glue (single fused producer pass): static joint gather, subtraction,
    # rotation flatten, concat, pad, and one transpose to the lane-dense layout.
    d = hand_joints[:, mapping, :] - hand_joints[:, mapping + 1, :]   # (B, 15, 3)
    rot = transf[:, 1:, :3, :3].reshape(B, 15, 9)                     # (B, 15, 9)
    stacked = jnp.concatenate([d, rot], axis=-1)                      # (B, 15, 12)

    # Batch tile: multiple of 128 lanes; large (up to max_tb) to amortize the
    # per-step overhead on v5e/v6e, but capped so the grid has >= 2 parallel
    # steps when B > 128 so both v7x TensorCores are used.
    tb = _round_up(min(max_tb, _round_up(B, 128)), 128)
    if B > 128:
        tb = min(tb, _round_up(pl.cdiv(B, 2), 128))
    Bp = _round_up(B, tb)
    if Bp != B:
        # Padded lanes produce NaN in-kernel (rsqrt(0)); sliced off below.
        stacked = jnp.pad(stacked, ((0, Bp - B), (0, 0), (0, 0)))
    in_t = jnp.transpose(stacked, (2, 1, 0))                          # (12, 15, Bp)

    grid = (Bp // tb,)

    # Double-buffered VMEM footprint: (12 + 9) planes * 16 sublanes * tb * 4B * 2.
    footprint = (12 + 9) * 16 * tb * 4 * 2
    vmem_bytes = int(min(48 * 1024 * 1024,
                         max(16 * 1024 * 1024, 1.5 * footprint + (2 << 20))))

    out_t = pl.pallas_call(
        _axis_kernel,
        out_shape=jax.ShapeDtypeStruct((9, 15, Bp), jnp.float32),
        grid_spec=pltpu.PrefetchScalarGridSpec(
            num_scalar_prefetch=0,
            grid=grid,
            in_specs=[pl.BlockSpec((12, 15, tb), lambda g: (0, 0, g))],
            out_specs=pl.BlockSpec((9, 15, tb), lambda g: (0, 0, g)),
        ),
        compiler_params=pltpu.CompilerParams(
            dimension_semantics=("parallel",),
            vmem_limit_bytes=vmem_bytes,
        ),
    )(in_t)

    out_t = out_t[:, :, :B]                                           # (9, 15, B)
    if lane_dense_output:
        return out_t

    out = jnp.transpose(out_t, (2, 1, 0))                             # (B, 15, 9)
    return out[:, :, 0:3], out[:, :, 3:6], out[:, :, 6:9]


def axis_layer_ref(hand_joints, transf):
    """Pure-JAX reference mirroring the PyTorch forward."""
    B = transf.shape[0]
    mapping = jnp.asarray(JOINTS_MAPPING, dtype=jnp.int32)
    b_axis = hand_joints[:, mapping, :] - hand_joints[:, mapping + 1, :]
    R = transf[:, 1:, :3, :3]                                 # (B, 15, 3, 3)
    b_axis = jnp.einsum("bkij,bki->bkj", R, b_axis)           # R^T @ v
    up = jnp.broadcast_to(_up_axis_base()[None], (B, 15, 3))
    l_axis = jnp.cross(b_axis, up)
    u_axis = jnp.cross(l_axis, b_axis)
    nb = jnp.linalg.norm(b_axis, axis=2, keepdims=True)
    nu = jnp.linalg.norm(u_axis, axis=2, keepdims=True)
    nl = jnp.linalg.norm(l_axis, axis=2, keepdims=True)
    return b_axis / nb, u_axis / nu, l_axis / nl


def _check(B, max_tb):
    key = jax.random.PRNGKey(0)
    k1, k2 = jax.random.split(key)
    hand_joints = jax.random.normal(k1, (B, 21, 3), dtype=jnp.float32)
    transf = jax.random.normal(k2, (B, 16, 4, 4), dtype=jnp.float32)

    b_axis, u_axis, l_axis = axis_layer_pallas(hand_joints, transf, max_tb=max_tb)
    jax.block_until_ready((b_axis, u_axis, l_axis))

    b_ref, u_ref, l_ref = axis_layer_ref(hand_joints, transf)
    assert np.allclose(np.asarray(b_axis), np.asarray(b_ref), atol=2e-5)
    assert np.allclose(np.asarray(u_axis), np.asarray(u_ref), atol=2e-5)
    assert np.allclose(np.asarray(l_axis), np.asarray(l_ref), atol=2e-5)


if __name__ == "__main__":
    _check(B=2, max_tb=8192)      # small batch, single padded 128-lane tile
    _check(B=260, max_tb=8192)    # B > 128 -> 2-step parallel grid + batch padding
    _check(B=260, max_tb=128)     # forced small tiles: multi-step grid path
    print("KERNEL_OK")
</pallas_src>

<mosaic_0001>
module attributes {stable_mosaic.version = 11 : i64} {
  func.func @_axis_kernel(%arg0: i32, %arg1: memref<12x15x128xf32, #tpu.memory_space<vmem>>, %arg2: memref<9x15x128xf32, #tpu.memory_space<vmem>>) attributes {dimension_semantics = [#tpu.dimension_semantics<parallel>], iteration_bounds = array<i64: 1>, scalar_prefetch = 0 : i64, scratch_operands = 0 : i64, tpu.core_type = #tpu.core_type<tc>, window_params = [{transform_indices = @transform_0, window_bounds = array<i64: 12, 15, 128>}, {transform_indices = @transform_1, window_bounds = array<i64: 9, 15, 128>}]} {
    %c0 = arith.constant 0 : index
    %c0_0 = arith.constant 0 : index
    %c0_1 = arith.constant 0 : index
    %0 = vector.load %arg1[%c0, %c0_0, %c0_1] : memref<12x15x128xf32, #tpu.memory_space<vmem>>, vector<1x15x128xf32>
    %1 = vector.shape_cast %0 : vector<1x15x128xf32> to vector<15x128xf32>
    %c1 = arith.constant 1 : index
    %c0_2 = arith.constant 0 : index
    %c0_3 = arith.constant 0 : index
    %2 = vector.load %arg1[%c1, %c0_2, %c0_3] : memref<12x15x128xf32, #tpu.memory_space<vmem>>, vector<1x15x128xf32>
    %3 = vector.shape_cast %2 : vector<1x15x128xf32> to vector<15x128xf32>
    %c2 = arith.constant 2 : index
    %c0_4 = arith.constant 0 : index
    %c0_5 = arith.constant 0 : index
    %4 = vector.load %arg1[%c2, %c0_4, %c0_5] : memref<12x15x128xf32, #tpu.memory_space<vmem>>, vector<1x15x128xf32>
    %5 = vector.shape_cast %4 : vector<1x15x128xf32> to vector<15x128xf32>
    %c3 = arith.constant 3 : index
    %c0_6 = arith.constant 0 : index
    %c0_7 = arith.constant 0 : index
    %6 = vector.load %arg1[%c3, %c0_6, %c0_7] : memref<12x15x128xf32, #tpu.memory_space<vmem>>, vector<1x15x128xf32>
    %7 = vector.shape_cast %6 : vector<1x15x128xf32> to vector<15x128xf32>
    %8 = arith.mulf %7, %1 : vector<15x128xf32>
    %c6 = arith.constant 6 : index
    %c0_8 = arith.constant 0 : index
    %c0_9 = arith.constant 0 : index
    %9 = vector.load %arg1[%c6, %c0_8, %c0_9] : memref<12x15x128xf32, #tpu.memory_space<vmem>>, vector<1x15x128xf32>
    %10 = vector.shape_cast %9 : vector<1x15x128xf32> to vector<15x128xf32>
    %11 = arith.mulf %10, %3 : vector<15x128xf32>
    %12 = arith.addf %8, %11 : vector<15x128xf32>
    %c9 = arith.constant 9 : index
    %c0_10 = arith.constant 0 : index
    %c0_11 = arith.constant 0 : index
    %13 = vector.load %arg1[%c9, %c0_10, %c0_11] : memref<12x15x128xf32, #tpu.memory_space<vmem>>, vector<1x15x128xf32>
    %14 = vector.shape_cast %13 : vector<1x15x128xf32> to vector<15x128xf32>
    %15 = arith.mulf %14, %5 : vector<15x128xf32>
    %16 = arith.addf %12, %15 : vector<15x128xf32>
    %c4 = arith.constant 4 : index
    %c0_12 = arith.constant 0 : index
    %c0_13 = arith.constant 0 : index
    %17 = vector.load %arg1[%c4, %c0_12, %c0_13] : memref<12x15x128xf32, #tpu.memory_space<vmem>>, vector<1x15x128xf32>
    %18 = vector.shape_cast %17 : vector<1x15x128xf32> to vector<15x128xf32>
    %19 = arith.mulf %18, %1 : vector<15x128xf32>
    %c7 = arith.constant 7 : index
    %c0_14 = arith.constant 0 : index
    %c0_15 = arith.constant 0 : index
    %20 = vector.load %arg1[%c7, %c0_14, %c0_15] : memref<12x15x128xf32, #tpu.memory_space<vmem>>, vector<1x15x128xf32>
    %21 = vector.shape_cast %20 : vector<1x15x128xf32> to vector<15x128xf32>
    %22 = arith.mulf %21, %3 : vector<15x128xf32>
    %23 = arith.addf %19, %22 : vector<15x128xf32>
    %c10 = arith.constant 10 : index
    %c0_16 = arith.constant 0 : index
    %c0_17 = arith.constant 0 : index
    %24 = vector.load %arg1[%c10, %c0_16, %c0_17] : memref<12x15x128xf32, #tpu.memory_space<vmem>>, vector<1x15x128xf32>
    %25 = vector.shape_cast %24 : vector<1x15x128xf32> to vector<15x128xf32>
    %26 = arith.mulf %25, %5 : vector<15x128xf32>
    %27 = arith.addf %23, %26 : vector<15x128xf32>
    %c5 = arith.constant 5 : index
    %c0_18 = arith.constant 0 : index
    %c0_19 = arith.constant 0 : index
    %28 = vector.load %arg1[%c5, %c0_18, %c0_19] : memref<12x15x128xf32, #tpu.memory_space<vmem>>, vector<1x15x128xf32>
    %29 = vector.shape_cast %28 : vector<1x15x128xf32> to vector<15x128xf32>
    %30 = arith.mulf %29, %1 : vector<15x128xf32>
    %c8 = arith.constant 8 : index
    %c0_20 = arith.constant 0 : index
    %c0_21 = arith.constant 0 : index
    %31 = vector.load %arg1[%c8, %c0_20, %c0_21] : memref<12x15x128xf32, #tpu.memory_space<vmem>>, vector<1x15x128xf32>
    %32 = vector.shape_cast %31 : vector<1x15x128xf32> to vector<15x128xf32>
    %33 = arith.mulf %32, %3 : vector<15x128xf32>
    %34 = arith.addf %30, %33 : vector<15x128xf32>
    %c11 = arith.constant 11 : index
    %c0_22 = arith.constant 0 : index
    %c0_23 = arith.constant 0 : index
    %35 = vector.load %arg1[%c11, %c0_22, %c0_23] : memref<12x15x128xf32, #tpu.memory_space<vmem>>, vector<1x15x128xf32>
    %36 = vector.shape_cast %35 : vector<1x15x128xf32> to vector<15x128xf32>
    %37 = arith.mulf %36, %5 : vector<15x128xf32>
    %38 = arith.addf %34, %37 : vector<15x128xf32>
    %39 = tpu.iota {dimensions = array<i32: 0>} : vector<15x128xi32>
    %c12_i32 = arith.constant 12 : i32
    %40 = vector.broadcast %c12_i32 : i32 to vector<15x128xi32>
    %41 = arith.cmpi sge, %39, %40 : vector<15x128xi32>
    %42 = arith.extui %41 : vector<15x128xi1> to vector<15x128xi32>
    %43 = arith.sitofp %42 : vector<15x128xi32> to vector<15x128xf32>
    %44 = arith.mulf %27, %43 : vector<15x128xf32>
    %45 = arith.subf %44, %38 : vector<15x128xf32>
    %46 = arith.subf %38, %16 : vector<15x128xf32>
    %47 = arith.mulf %46, %43 : vector<15x128xf32>
    %48 = arith.mulf %27, %43 : vector<15x128xf32>
    %49 = arith.subf %16, %48 : vector<15x128xf32>
    %50 = arith.mulf %47, %38 : vector<15x128xf32>
    %51 = arith.mulf %49, %27 : vector<15x128xf32>
    %52 = arith.subf %50, %51 : vector<15x128xf32>
    %53 = arith.mulf %49, %16 : vector<15x128xf32>
    %54 = arith.mulf %45, %38 : vector<15x128xf32>
    %55 = arith.subf %53, %54 : vector<15x128xf32>
    %56 = arith.mulf %45, %27 : vector<15x128xf32>
    %57 = arith.mulf %47, %16 : vector<15x128xf32>
    %58 = arith.subf %56, %57 : vector<15x128xf32>
    %59 = arith.mulf %16, %16 : vector<15x128xf32>
    %60 = arith.mulf %27, %27 : vector<15x128xf32>
    %61 = arith.addf %59, %60 : vector<15x128xf32>
    %62 = arith.mulf %38, %38 : vector<15x128xf32>
    %63 = arith.addf %61, %62 : vector<15x128xf32>
    %64 = math.rsqrt %63 : vector<15x128xf32>
    %65 = arith.mulf %45, %45 : vector<15x128xf32>
    %66 = arith.mulf %47, %47 : vector<15x128xf32>
    %67 = arith.addf %65, %66 : vector<15x128xf32>
    %68 = arith.mulf %49, %49 : vector<15x128xf32>
    %69 = arith.addf %67, %68 : vector<15x128xf32>
    %70 = math.rsqrt %69 : vector<15x128xf32>
    %71 = arith.mulf %64, %70 : vector<15x128xf32>
    %72 = arith.mulf %16, %64 : vector<15x128xf32>
    %c0_24 = arith.constant 0 : index
    %c0_25 = arith.constant 0 : index
    %c0_26 = arith.constant 0 : index
    %73 = vector.load %arg2[%c0_24, %c0_25, %c0_26] : memref<9x15x128xf32, #tpu.memory_space<vmem>>, vector<1x15x128xf32>
    %74 = vector.shape_cast %73 : vector<1x15x128xf32> to vector<15x128xf32>
    %75 = vector.shape_cast %72 : vector<15x128xf32> to vector<1x15x128xf32>
    tpu.vector_store %arg2[%c0_24, %c0_25, %c0_26], %75 {strides = array<i32>} : memref<9x15x128xf32, #tpu.memory_space<vmem>>, vector<1x15x128xf32>,
    %76 = arith.mulf %27, %64 : vector<15x128xf32>
    %c1_27 = arith.constant 1 : index
    %c0_28 = arith.constant 0 : index
    %c0_29 = arith.constant 0 : index
    %77 = vector.load %arg2[%c1_27, %c0_28, %c0_29] : memref<9x15x128xf32, #tpu.memory_space<vmem>>, vector<1x15x128xf32>
    %78 = vector.shape_cast %77 : vector<1x15x128xf32> to vector<15x128xf32>
    %79 = vector.shape_cast %76 : vector<15x128xf32> to vector<1x15x128xf32>
    tpu.vector_store %arg2[%c1_27, %c0_28, %c0_29], %79 {strides = array<i32>} : memref<9x15x128xf32, #tpu.memory_space<vmem>>, vector<1x15x128xf32>,
    %80 = arith.mulf %38, %64 : vector<15x128xf32>
    %c2_30 = arith.constant 2 : index
    %c0_31 = arith.constant 0 : index
    %c0_32 = arith.constant 0 : index
    %81 = vector.load %arg2[%c2_30, %c0_31, %c0_32] : memref<9x15x128xf32, #tpu.memory_space<vmem>>, vector<1x15x128xf32>
    %82 = vector.shape_cast %81 : vector<1x15x128xf32> to vector<15x128xf32>
    %83 = vector.shape_cast %80 : vector<15x128xf32> to vector<1x15x128xf32>
    tpu.vector_store %arg2[%c2_30, %c0_31, %c0_32], %83 {strides = array<i32>} : memref<9x15x128xf32, #tpu.memory_space<vmem>>, vector<1x15x128xf32>,
    %84 = arith.mulf %52, %71 : vector<15x128xf32>
    %c3_33 = arith.constant 3 : index
    %c0_34 = arith.constant 0 : index
    %c0_35 = arith.constant 0 : index
    %85 = vector.load %arg2[%c3_33, %c0_34, %c0_35] : memref<9x15x128xf32, #tpu.memory_space<vmem>>, vector<1x15x128xf32>
    %86 = vector.shape_cast %85 : vector<1x15x128xf32> to vector<15x128xf32>
    %87 = vector.shape_cast %84 : vector<15x128xf32> to vector<1x15x128xf32>
    tpu.vector_store %arg2[%c3_33, %c0_34, %c0_35], %87 {strides = array<i32>} : memref<9x15x128xf32, #tpu.memory_space<vmem>>, vector<1x15x128xf32>,
    %88 = arith.mulf %55, %71 : vector<15x128xf32>
    %c4_36 = arith.constant 4 : index
    %c0_37 = arith.constant 0 : index
    %c0_38 = arith.constant 0 : index
    %89 = vector.load %arg2[%c4_36, %c0_37, %c0_38] : memref<9x15x128xf32, #tpu.memory_space<vmem>>, vector<1x15x128xf32>
    %90 = vector.shape_cast %89 : vector<1x15x128xf32> to vector<15x128xf32>
    %91 = vector.shape_cast %88 : vector<15x128xf32> to vector<1x15x128xf32>
    tpu.vector_store %arg2[%c4_36, %c0_37, %c0_38], %91 {strides = array<i32>} : memref<9x15x128xf32, #tpu.memory_space<vmem>>, vector<1x15x128xf32>,
    %92 = arith.mulf %58, %71 : vector<15x128xf32>
    %c5_39 = arith.constant 5 : index
    %c0_40 = arith.constant 0 : index
    %c0_41 = arith.constant 0 : index
    %93 = vector.load %arg2[%c5_39, %c0_40, %c0_41] : memref<9x15x128xf32, #tpu.memory_space<vmem>>, vector<1x15x128xf32>
    %94 = vector.shape_cast %93 : vector<1x15x128xf32> to vector<15x128xf32>
    %95 = vector.shape_cast %92 : vector<15x128xf32> to vector<1x15x128xf32>
    tpu.vector_store %arg2[%c5_39, %c0_40, %c0_41], %95 {strides = array<i32>} : memref<9x15x128xf32, #tpu.memory_space<vmem>>, vector<1x15x128xf32>,
    %96 = arith.mulf %45, %70 : vector<15x128xf32>
    %c6_42 = arith.constant 6 : index
    %c0_43 = arith.constant 0 : index
    %c0_44 = arith.constant 0 : index
    %97 = vector.load %arg2[%c6_42, %c0_43, %c0_44] : memref<9x15x128xf32, #tpu.memory_space<vmem>>, vector<1x15x128xf32>
    %98 = vector.shape_cast %97 : vector<1x15x128xf32> to vector<15x128xf32>
    %99 = vector.shape_cast %96 : vector<15x128xf32> to vector<1x15x128xf32>
    tpu.vector_store %arg2[%c6_42, %c0_43, %c0_44], %99 {strides = array<i32>} : memref<9x15x128xf32, #tpu.memory_space<vmem>>, vector<1x15x128xf32>,
    %100 = arith.mulf %47, %70 : vector<15x128xf32>
    %c7_45 = arith.constant 7 : index
    %c0_46 = arith.constant 0 : index
    %c0_47 = arith.constant 0 : index
    %101 = vector.load %arg2[%c7_45, %c0_46, %c0_47] : memref<9x15x128xf32, #tpu.memory_space<vmem>>, vector<1x15x128xf32>
    %102 = vector.shape_cast %101 : vector<1x15x128xf32> to vector<15x128xf32>
    %103 = vector.shape_cast %100 : vector<15x128xf32> to vector<1x15x128xf32>
    tpu.vector_store %arg2[%c7_45, %c0_46, %c0_47], %103 {strides = array<i32>} : memref<9x15x128xf32, #tpu.memory_space<vmem>>, vector<1x15x128xf32>,
    %104 = arith.mulf %49, %70 : vector<15x128xf32>
    %c8_48 = arith.constant 8 : index
    %c0_49 = arith.constant 0 : index
    %c0_50 = arith.constant 0 : index
    %105 = vector.load %arg2[%c8_48, %c0_49, %c0_50] : memref<9x15x128xf32, #tpu.memory_space<vmem>>, vector<1x15x128xf32>
    %106 = vector.shape_cast %105 : vector<1x15x128xf32> to vector<15x128xf32>
    %107 = vector.shape_cast %104 : vector<15x128xf32> to vector<1x15x128xf32>
    tpu.vector_store %arg2[%c8_48, %c0_49, %c0_50], %107 {strides = array<i32>} : memref<9x15x128xf32, #tpu.memory_space<vmem>>, vector<1x15x128xf32>,
    return
  }
  func.func @transform_0(%arg0: i32) -> (i32, i32, i32) {
    %c0_i32 = arith.constant 0 : i32
    %c0_i32_0 = arith.constant 0 : i32
    %c0_i32_1 = arith.constant 0 : i32
    return %c0_i32, %c0_i32_0, %arg0 : i32, i32, i32
  }
  func.func @transform_1(%arg0: i32) -> (i32, i32, i32) {
    %c0_i32 = arith.constant 0 : i32
    %c0_i32_0 = arith.constant 0 : i32
    %c0_i32_1 = arith.constant 0 : i32
    return %c0_i32, %c0_i32_0, %arg0 : i32, i32, i32
  }
}

</mosaic_0001>

<bundles_post_ra>
// kernel: tpu_custom_call.1
= control target key start
LH: loop header
LB: loop body
LE: loop exit
PB: predicated region body
PF: predicated region fallthrough
CT: control target
= control target key end

     0   :  { %6 = vsyncpa [#allocation3], 0  ;;  %s447_s0 = inlined_call_operand.hbm [shape: f32[12,15,128], index: 0, kind: input, shape index: {}]   ;;  %s448_s1 = inlined_call_operand.hbm [shape: f32[9,15,128], index: 1, kind: output, shape index: {}]  }
   0x1   :  { %7 = vsyncpa [#allocation4], 0  ;;  %s12_s8 = sshll.u32 %s447_s0, 4  ;;  %s318_s9 = smov [#allocation2]   ;;  %s13_s8 = int_to_ptr.hbm [resolvable:$true] %s12_s8 }
   0x2   :  { %s14_s10 = sshll.u32 %s318_s9, 4  ;;  %s319_s11 = smov 128   ;;  %s15_s10 = int_to_ptr.vmem [resolvable:$true] %s14_s10 }
   0x3   :  { %s320_s12 = smov 8  }
   0x4   :  { %20 = dma.hbm_to_vmem [thread:$0]  %s13_s8, 3072, %s15_s10, [#allocation3], %s319_s11, %s319_s11, %s320_s12  }
   0x5   :  { %314 = dma.done.wait [#allocation3], 3072  }
   0x6   :  { %315 = vsyncadd [#allocation3], 4294964224  ;;  %v90_v0 = vlaneseq  ;;  %v25_v3 = vld [vmem:[#allocation2] sm:$0xff]  ;;  %v28_v4 = vld [vmem:[#allocation2 + $0x10] sm:$0xff]  ;;  %v321_v21 = vmov 0.0   ;;  %s322_s0 = smov [#allocation5]  }
   0x7   :  { %v31_v5 = vld [vmem:[#allocation2 + $0x20] sm:$0xff]  ;;  %v34_v6 = vld [vmem:[#allocation2 + $0x30] sm:$0xff]  ;;  %v26_v27 = vld [vmem:[#allocation2 + $0x8] sm:$0x7f]  ;;  %s237_s13 = sshll.u32 %s322_s0, 4  ;;  %s239_s16 = sshll.u32 %s448_s1, 4  ;;  %s238_s13 = int_to_ptr.vmem [resolvable:$true] %s237_s13  ;;  %s240_s16 = int_to_ptr.hbm [resolvable:$true] %s239_s16 }
   0x8   :  { %v91_v1 = vshrl.u32 %v90_v0, 7  ;;  %v39_v7 = vld [vmem:[#allocation2 + $0x60] sm:$0xff]  ;;  %v46_v8 = vld [vmem:[#allocation2 + $0x90] sm:$0xff]  ;;  %v36_v9 = vmul.f32 %v34_v6, %v25_v3  ;;  %v29_v28 = vld [vmem:[#allocation2 + $0x18] sm:$0x7f] }
   0x9   :  { %v41_v10 = vmul.f32 %v39_v7, %v28_v4  ;;  %v48_v11 = vmul.f32 %v46_v8, %v31_v5  ;;  %v53_v12 = vld [vmem:[#allocation2 + $0x40] sm:$0xff]  ;;  %v58_v13 = vld [vmem:[#allocation2 + $0x70] sm:$0xff]  ;;  %v32_v29 = vld [vmem:[#allocation2 + $0x28] sm:$0x7f] }
   0xa   :  { %v92_v2 = vadd.s32 8, %v91_v1  ;;  %v65_v14 = vld [vmem:[#allocation2 + $0xa0] sm:$0xff]  ;;  %v55_v15 = vmul.f32 %v53_v12, %v25_v3  ;;  %v60_v16 = vmul.f32 %v58_v13, %v28_v4  ;;  %v72_v18 = vld [vmem:[#allocation2 + $0x50] sm:$0xff]  ;;  %v35_v31 = vld [vmem:[#allocation2 + $0x38] sm:$0x7f] }
   0xb   :  { %v67_v17 = vmul.f32 %v65_v14, %v31_v5  ;;  %v77_v19 = vld [vmem:[#allocation2 + $0x80] sm:$0xff]  ;;  %v84_v20 = vld [vmem:[#allocation2 + $0xb0] sm:$0xff]  ;;  %v43_v23 = vadd.f32 %v41_v10, %v36_v9  ;;  %v74_v24 = vmul.f32 %v72_v18, %v25_v3  ;;  %v40_v32 = vld [vmem:[#allocation2 + $0x68] sm:$0x7f]  ;;  %v37_v36 = vmul.f32 %v35_v31, %v26_v27 }
   0xc   :  { %vm94_vm0 = vcmp.ge.s32.totalorder %v92_v2, 12  ;;  %v79_v25 = vmul.f32 %v77_v19, %v28_v4  ;;  %v86_v26 = vmul.f32 %v84_v20, %v31_v5  ;;  %v62_v30 = vadd.f32 %v60_v16, %v55_v15  ;;  %v47_v33 = vld [vmem:[#allocation2 + $0x98] sm:$0x7f]  ;;  %v54_v38 = vld [vmem:[#allocation2 + $0x48] sm:$0x7f] }
   0xd   :  { %v252_v22 = vsel %vm94_vm0, 1.0, %v321_v21  ;;  %v340_v34 = vadd.f32 %v48_v11, %v43_v23  ;;  %v42_v37 = vmul.f32 %v40_v32, %v29_v28  ;;  %v59_v39 = vld [vmem:[#allocation2 + $0x78] sm:$0x7f]  ;;  %v66_v40 = vld [vmem:[#allocation2 + $0xa8] sm:$0x7f]  ;;  %v49_v42 = vmul.f32 %v47_v33, %v32_v29 }
   0xe   :  { %v81_v35 = vadd.f32 %v79_v25, %v74_v24  ;;  %v342_v41 = vadd.f32 %v67_v17, %v62_v30  ;;  %v56_v43 = vmul.f32 %v54_v38, %v26_v27  ;;  %v61_v44 = vmul.f32 %v59_v39, %v29_v28  ;;  %v73_v45 = vld [vmem:[#allocation2 + $0x58] sm:$0x7f]  ;;  %v78_v46 = vld [vmem:[#allocation2 + $0x88] sm:$0x7f] }
   0xf   :  { %v85_v47 = vld [vmem:[#allocation2 + $0xb8] sm:$0x7f]  ;;  %v127_v49 = vmul.f32 %v340_v34, %v340_v34  ;;  %v44_v50 = vadd.f32 %v42_v37, %v37_v36  ;;  %v68_v51 = vmul.f32 %v66_v40, %v32_v29  ;;  %v75_v54 = vmul.f32 %v73_v45, %v26_v27 }
  0x10   :  { %v344_v48 = vadd.f32 %v86_v26, %v81_v35  ;;  %v129_v52 = vmul.f32 %v342_v41, %v342_v41  ;;  %v63_v53 = vadd.f32 %v61_v44, %v56_v43  ;;  %v80_v55 = vmul.f32 %v78_v46, %v29_v28 }
  0x11   :  { %v352_v57 = vadd.f32 %v49_v42, %v44_v50  ;;  %v87_v58 = vmul.f32 %v85_v47, %v32_v29  ;;  %v99_v59 = vmul.f32 0.0, %v342_v41 }
  0x12   :  { %v133_v56 = vmul.f32 %v344_v48, %v344_v48  ;;  %v131_v60 = vadd.f32 %v129_v52, %v127_v49  ;;  %v355_v61 = vadd.f32 %v68_v51, %v63_v53  ;;  %v82_v62 = vadd.f32 %v80_v55, %v75_v54 }
  0x13   :  { %v103_v63 = vsub.f32 %v344_v48, %v340_v34  ;;  %v128_v0 = vmul.f32 %v352_v57, %v352_v57  ;;  %v362_v1 = vsub.f32 %v99_v59, %v344_v48  ;;  %v365_v2 = vsub.f32 %v340_v34, %v99_v59 }
  0x14   :  { %v135_v3 = vadd.f32 %v133_v56, %v131_v60  ;;  %v367_v4 = vadd.f32 %v87_v58, %v82_v62  ;;  %v130_v5 = vmul.f32 %v355_v61, %v355_v61  ;;  %v100_v8 = vmul.f32 %v252_v22, %v355_v61 }
  0x15   :  { %v371_v6 = vmul.f32 0.0, %v103_v63  ;;  %v157_v7 = vmul.f32 %v362_v1, %v362_v1  ;;  %v163_v12 = vmul.f32 %v365_v2, %v365_v2  ;;  %v111_v35 = vmul.f32 %v365_v2, %v342_v41 }
  0x16   :  { %258 = vrsqrt.f32 %v135_v3  ;;  %v132_v9 = vadd.f32 %v130_v5, %v128_v0  ;;  %v134_v10 = vmul.f32 %v367_v4, %v367_v4  ;;  %v383_v13 = vsub.f32 %v100_v8, %v367_v4 }
  0x17   :  { %v159_v11 = vmul.f32 %v371_v6, %v371_v6  ;;  %v104_v14 = vsub.f32 %v367_v4, %v352_v57  ;;  %v388_v16 = vsub.f32 %v352_v57, %v100_v8  ;;  %vm143_vm1 = vweird.f32 %v135_v3 }
  0x18   :  { %v136_v15 = vadd.f32 %v134_v10, %v132_v9  ;;  %v158_v19 = vmul.f32 %v383_v13, %v383_v13  ;;  %v109_v39 = vmul.f32 %v371_v6, %v344_v48  ;;  %v115_v42 = vmul.f32 %v365_v2, %v340_v34 }
  0x19   :  { %v161_v17 = vadd.f32 %v159_v11, %v157_v7  ;;  %v390_v18 = vmul.f32 %v252_v22, %v104_v14  ;;  %v164_v24 = vmul.f32 %v388_v16, %v388_v16  ;;  %v117_v43 = vmul.f32 %v362_v1, %v344_v48 }
  0x1a   :  { %260 = vrsqrt.f32 %v136_v15  ;;  %vm153_vm4 = vweird.f32 %v136_v15  ;;  %v121_v54 = vmul.f32 %v362_v1, %v342_v41  ;;  %v123_v55 = vmul.f32 %v371_v6, %v340_v34 }
  0x1b   :  { %v165_v20 = vadd.f32 %v163_v12, %v161_v17  ;;  %v160_v21 = vmul.f32 %v390_v18, %v390_v18  ;;  %v113_v56 = vsub.f32 %v109_v39, %v111_v35  ;;  %v110_v59 = vmul.f32 %v390_v18, %v367_v4 }
  0x1c   :  { %v259_v23 = vpop.eup %258  ;;  %v112_v60 = vmul.f32 %v388_v16, %v355_v61  ;;  %v119_v63 = vsub.f32 %v115_v42, %v117_v43  ;;  %v125_v8 = vsub.f32 %v121_v54, %v123_v55  ;;  %v118_v10 = vmul.f32 %v383_v13, %v367_v4 }
  0x1d   :  { %v138_v25 = vmul.f32 %v259_v23, %v135_v3  ;;  %262 = vrsqrt.f32 %v165_v20  ;;  %v162_v26 = vadd.f32 %v160_v21, %v158_v19  ;;  %vm144_vm2 = vweird.f32 %v259_v23 }
  0x1e   :  { %vm145_vm3 = vmor %vm143_vm1, %vm144_vm2  ;;  %vm173_vm6 = vweird.f32 %v165_v20  ;;  %v122_v11 = vmul.f32 %v383_v13, %v355_v61  ;;  %v124_v12 = vmul.f32 %v390_v18, %v352_v57 }
  0x1f   :  { %v139_v27 = vmul.f32 %v259_v23, %v138_v25  ;;  %v398_v29 = vadd.f32 %v164_v24, %v162_v26 }
  0x20   :  { %v261_v28 = vpop.eup %260 }
  0x21   :  { %v140_v22 = vmul.f32 0.5, %v139_v27  ;;  %v148_v30 = vmul.f32 %v261_v28, %v136_v15  ;;  %264 = vrsqrt.f32 %v398_v29  ;;  %vm154_vm5 = vweird.f32 %v261_v28 }
  0x22   :  { %vm155_vm8 = vmor %vm153_vm4, %vm154_vm5  ;;  %vm183_vm10 = vweird.f32 %v398_v29 }
  0x23   :  { %v263_v31 = vpop.eup %262  ;;  %v141_v32 = vsub.f32 1.5, %v140_v22  ;;  %v149_v33 = vmul.f32 %v261_v28, %v148_v30 }
  0x24   :  { %v168_v36 = vmul.f32 %v263_v31, %v165_v20  ;;  %vm174_vm7 = vweird.f32 %v263_v31 }
  0x25   :  { %v142_v37 = vmul.f32 %v259_v23, %v141_v32  ;;  %v150_v38 = vmul.f32 0.5, %v149_v33  ;;  %vm175_vm9 = vmor %vm173_vm6, %vm174_vm7 }
  0x26   :  { %v169_v40 = vmul.f32 %v263_v31, %v168_v36 }
  0x27   :  { %v146_v44 = vsel %vm145_vm3, %v259_v23, %v142_v37  ;;  %v151_v45 = vsub.f32 1.5, %v150_v38  ;;  %v265_v46 = vpop.eup %264 }
  0x28   :  { %v189_v47 = vmul.f32 %v146_v44, %v340_v34  ;;  %v193_v49 = vmul.f32 %v146_v44, %v342_v41  ;;  %v198_v50 = vmul.f32 %v146_v44, %v344_v48  ;;  %v170_v51 = vmul.f32 0.5, %v169_v40 }
  0x29   :  { %v152_v52 = vmul.f32 %v261_v28, %v151_v45  ;;  %v178_v53 = vmul.f32 %v265_v46, %v398_v29  ;;  %v116_v41 = vmul.f32 %v388_v16, %v352_v57  ;;  %vm184_vm11 = vweird.f32 %v265_v46 }
  0x2a   :  { %191 = vst [vmem:[#allocation5] sm:$0xff] %v189_v47  ;;  %v171_v58 = vsub.f32 1.5, %v170_v51  ;;  %vm185_vm12 = vmor %vm183_vm10, %vm184_vm11 }
  0x2b   :  { %v156_v48 = vsel %vm155_vm8, %v261_v28, %v152_v52  ;;  %196 = vst [vmem:[#allocation5 + $0x10] sm:$0xff] %v193_v49  ;;  %v179_v62 = vmul.f32 %v265_v46, %v178_v53  ;;  %v120_v25 = vsub.f32 %v116_v41, %v118_v10 }
  0x2c   :  { %v190_v34 = vmul.f32 %v156_v48, %v352_v57  ;;  %v194_v0 = vmul.f32 %v156_v48, %v355_v61  ;;  %201 = vst [vmem:[#allocation5 + $0x20] sm:$0xff] %v198_v50  ;;  %v199_v3 = vmul.f32 %v156_v48, %v367_v4  ;;  %v172_v5 = vmul.f32 %v263_v31, %v171_v58 }
  0x2d   :  { %v180_v7 = vmul.f32 0.5, %v179_v62  ;;  %v114_v4 = vsub.f32 %v110_v59, %v112_v60  ;;  %v126_v61 = vsub.f32 %v122_v11, %v124_v12 }
  0x2e   :  { %192 = vst [vmem:[#allocation5 + $0x8] sm:$0x7f] %v190_v34  ;;  %v176_v9 = vsel %vm175_vm9, %v263_v31, %v172_v5 }
  0x2f   :  { %197 = vst [vmem:[#allocation5 + $0x18] sm:$0x7f] %v194_v0  ;;  %v187_v14 = vmul.f32 %v176_v9, %v146_v44  ;;  %v181_v15 = vsub.f32 1.5, %v180_v7  ;;  %v218_v17 = vmul.f32 %v176_v9, %v362_v1  ;;  %v223_v19 = vmul.f32 %v176_v9, %v371_v6 }
  0x30   :  { %202 = vst [vmem:[#allocation5 + $0x28] sm:$0x7f] %v199_v3  ;;  %v228_v22 = vmul.f32 %v176_v9, %v365_v2 }
  0x31   :  { %v203_v20 = vmul.f32 %v187_v14, %v113_v56  ;;  %v182_v21 = vmul.f32 %v265_v46, %v181_v15  ;;  %v208_v23 = vmul.f32 %v187_v14, %v119_v63  ;;  %v213_v24 = vmul.f32 %v187_v14, %v125_v8  ;;  %221 = vst [vmem:[#allocation5 + $0x60] sm:$0xff] %v218_v17 }
  0x32   :  { %226 = vst [vmem:[#allocation5 + $0x70] sm:$0xff] %v223_v19 }
  0x33   :  { %206 = vst [vmem:[#allocation5 + $0x30] sm:$0xff] %v203_v20  ;;  %v186_v57 = vsel %vm185_vm12, %v265_v46, %v182_v21 }
  0x34   :  { %v188_v26 = vmul.f32 %v186_v57, %v156_v48  ;;  %211 = vst [vmem:[#allocation5 + $0x40] sm:$0xff] %v208_v23  ;;  %v219_v27 = vmul.f32 %v186_v57, %v383_v13  ;;  %v224_v1 = vmul.f32 %v186_v57, %v390_v18  ;;  %v229_v30 = vmul.f32 %v186_v57, %v388_v16 }
  0x35   :  { %216 = vst [vmem:[#allocation5 + $0x50] sm:$0xff] %v213_v24 }
  0x36   :  { %v204_v6 = vmul.f32 %v188_v26, %v114_v4  ;;  %v209_v28 = vmul.f32 %v188_v26, %v120_v25  ;;  %v214_v29 = vmul.f32 %v188_v26, %v126_v61  ;;  %222 = vst [vmem:[#allocation5 + $0x68] sm:$0x7f] %v219_v27 }
  0x37   :  { %227 = vst [vmem:[#allocation5 + $0x78] sm:$0x7f] %v224_v1 }
  0x38   :  { %207 = vst [vmem:[#allocation5 + $0x38] sm:$0x7f] %v204_v6 }
  0x39   :  { %212 = vst [vmem:[#allocation5 + $0x48] sm:$0x7f] %v209_v28 }
  0x3a   :  { %217 = vst [vmem:[#allocation5 + $0x58] sm:$0x7f] %v214_v29 }
  0x3b   :  { %231 = vst [vmem:[#allocation5 + $0x80] sm:$0xff] %v228_v22 }
  0x3c   :  { %232 = vst [vmem:[#allocation5 + $0x88] sm:$0x7f] %v229_v30 }
  0x3d   :  { %245 = dma.vmem_to_hbm [thread:$0]  %s238_s13, 2304, %s240_s16, [#allocation4], %s319_s11, %s319_s11, %s320_s12  }
  0x3e   :  { %316 = dma.done.wait [#allocation4], 2304  }
  0x3f   :  { %317 = vsyncadd [#allocation4], 4294964992 }
  0x40   :  { %250 = vsyncpa [#allocation3], 1 }
  0x41   :  { %251 = vsyncpa [#allocation4], 1 }

</bundles_post_ra>
